<compile_context>
chip_gen: v5e
topology: v5e:2x2
jax: 0.10.0
libtpu: 0.0.40
codegen_flags: <defaults>
</compile_context>

<pallas_src>
import functools

import jax
import jax.numpy as jnp
from jax import lax
from jax.experimental import pallas as pl
from jax.experimental.pallas import tpu as pltpu

_SUBLANE = 8
_EPS = 1e-5


def _round_up(n, m):
    return ((n + m - 1) // m) * m


def _vmem_limit_bytes():
    """Per-generation scoped-VMEM limit: ~half of physical VMEM, capped at
    64 MiB (v5e/v6e have 128 MiB physical, v7x only 64 MiB per TensorCore)."""
    cap = 64 * 1024 * 1024
    try:
        cap = int(pltpu.get_tpu_info().vmem_capacity_bytes)
    except Exception:
        pass
    return max(32 * 1024 * 1024, min(cap // 2, 64 * 1024 * 1024))


def _choose_tile_g(G, nsample, c_max, vmem_limit):
    """Groups (of `nsample` rows each) per tile.

    Row count is derived from the VMEM budget (double-buffered bf16 in/out +
    f32 temps ~= 12 B/row/channel, kept at ~half the scoped limit) and rounded
    to a multiple of 8 sublanes.  A divisor of G close below the target is
    preferred (no row padding / masking at all); tiny G falls back to a
    full-extent block, which is legal regardless of the 8-row constraint."""
    if G <= _SUBLANE:
        return G
    bytes_per_row = 12 * max(c_max, 1)
    target_rows = max(nsample, vmem_limit // (2 * bytes_per_row))
    tile_g = (target_rows // nsample) // _SUBLANE * _SUBLANE
    tile_g = max(_SUBLANE, min(tile_g, _round_up(G, _SUBLANE)))
    cand = tile_g
    while cand >= max(_SUBLANE, tile_g // 2):
        if G % cand == 0:
            return cand
        cand -= _SUBLANE
    return tile_g


def _mosaic_params(semantics, vmem_limit):
    return pltpu.CompilerParams(
        dimension_semantics=semantics,
        vmem_limit_bytes=int(vmem_limit),
    )


def _row_mask(tile_m, m_valid):
    row = pl.program_id(0) * tile_m + lax.broadcasted_iota(
        jnp.int32, (tile_m, 1), 0)
    return row < m_valid


# --------------------------------------------------------------------------
# Pallas kernels
# --------------------------------------------------------------------------

def _ingest_stats_kernel(x_ref, o_ref, colsum_ref, gram_ref):
    """Fused ingest: read the (row-padded) f32 activations once, write the
    bf16 slab once and accumulate colsum(X) / X^T X for layer-1's BatchNorm in
    the same pass.  Padded rows are zeros, so they contribute nothing here."""
    @pl.when(pl.program_id(0) == 0)
    def _():
        colsum_ref[...] = jnp.zeros_like(colsum_ref)
        gram_ref[...] = jnp.zeros_like(gram_ref)

    x = x_ref[...]                                           # (tile_m, C) f32
    o_ref[...] = x.astype(o_ref.dtype)                       # bf16 slab
    colsum_ref[...] += jnp.sum(x, axis=0, keepdims=True)
    # X^T X with f32 accumulation (contraction over the row axis).
    # TODO(synk): if Mosaic MLIR shows an XLU transpose here, accumulate per
    # 128-row sub-blocks instead.
    gram_ref[...] += lax.dot_general(
        x, x, (((0,), (0,)), ((), ())), preferred_element_type=jnp.float32)


def _conv_bn_relu_stats_kernel(x_ref, w_ref, scale_ref, shift_ref,
                               o_ref, colsum_ref, gram_ref,
                               *, tile_m, m_valid, need_mask):
    """Fused 1x1 conv (matmul) + folded BatchNorm + ReLU for one row tile.
    The epilogue accumulates the colsum / Gram stats the *next* layer's BN
    needs, so each layer costs one HBM read + one HBM write of activations."""
    @pl.when(pl.program_id(0) == 0)
    def _():
        colsum_ref[...] = jnp.zeros_like(colsum_ref)
        gram_ref[...] = jnp.zeros_like(gram_ref)

    y = jnp.dot(x_ref[...], w_ref[...], preferred_element_type=jnp.float32)
    y = jnp.maximum(y * scale_ref[...] + shift_ref[...], 0.0)
    if need_mask:
        # Zero input rows produce ReLU(shift) != 0: keep padded rows out of the
        # next layer's statistics (and store them as zeros).
        y = jnp.where(_row_mask(tile_m, m_valid), y, 0.0)
    out = y.astype(o_ref.dtype)                              # bf16, true width
    o_ref[...] = out
    colsum_ref[...] += jnp.sum(y, axis=0, keepdims=True)     # reuse f32 y
    gram_ref[...] += lax.dot_general(                        # bf16 MXU, f32 acc
        out, out, (((0,), (0,)), ((), ())), preferred_element_type=jnp.float32)


def _conv_bn_relu_maxpool_kernel(x_ref, w_ref, scale_ref, shift_ref, o_ref,
                                 *, nsample, tile_g):
    """Last MLP layer fused with the max over the nsample (neighbor) axis, so
    the largest (M, C_out) intermediate never touches HBM."""
    y = jnp.dot(x_ref[...], w_ref[...], preferred_element_type=jnp.float32)
    y = jnp.maximum(y * scale_ref[...] + shift_ref[...], 0.0)
    y = y.reshape(tile_g, nsample, y.shape[-1])
    o_ref[...] = jnp.max(y, axis=1).astype(o_ref.dtype)


# --------------------------------------------------------------------------
# pallas_call wrappers
# --------------------------------------------------------------------------

def ingest_stats(x_raw, tile_m, vmem_limit):
    M_pad, C = x_raw.shape
    grid = M_pad // tile_m
    flops = 2 * M_pad * C * C
    bytes_acc = M_pad * C * (4 + 2) + (C + C * C) * 4
    return pl.pallas_call(
        _ingest_stats_kernel,
        out_shape=(jax.ShapeDtypeStruct((M_pad, C), jnp.bfloat16),
                   jax.ShapeDtypeStruct((1, C), jnp.float32),
                   jax.ShapeDtypeStruct((C, C), jnp.float32)),
        grid=(grid,),
        in_specs=[pl.BlockSpec((tile_m, C), lambda i: (i, 0))],
        out_specs=(pl.BlockSpec((tile_m, C), lambda i: (i, 0)),
                   pl.BlockSpec((1, C), lambda i: (0, 0)),
                   pl.BlockSpec((C, C), lambda i: (0, 0))),
        compiler_params=_mosaic_params(("arbitrary",), vmem_limit),
        cost_estimate=pl.CostEstimate(flops=int(flops), transcendentals=0,
                                      bytes_accessed=int(bytes_acc)),
    )(x_raw)


def conv_bn_relu_stats(x, w, scale, shift, tile_m, m_valid, need_mask,
                       vmem_limit):
    M_pad, Cin = x.shape
    Cout = w.shape[1]
    grid = M_pad // tile_m
    kernel = functools.partial(_conv_bn_relu_stats_kernel, tile_m=tile_m,
                               m_valid=m_valid, need_mask=need_mask)
    flops = 2 * M_pad * Cout * (Cin + Cout)
    bytes_acc = M_pad * (Cin + Cout) * 2 + (Cin + 2) * Cout * 4 + Cout * Cout * 4
    return pl.pallas_call(
        kernel,
        out_shape=(jax.ShapeDtypeStruct((M_pad, Cout), jnp.bfloat16),
                   jax.ShapeDtypeStruct((1, Cout), jnp.float32),
                   jax.ShapeDtypeStruct((Cout, Cout), jnp.float32)),
        grid=(grid,),
        in_specs=[
            pl.BlockSpec((tile_m, Cin), lambda i: (i, 0)),
            pl.BlockSpec((Cin, Cout), lambda i: (0, 0)),
            pl.BlockSpec((1, Cout), lambda i: (0, 0)),
            pl.BlockSpec((1, Cout), lambda i: (0, 0)),
        ],
        out_specs=(pl.BlockSpec((tile_m, Cout), lambda i: (i, 0)),
                   pl.BlockSpec((1, Cout), lambda i: (0, 0)),
                   pl.BlockSpec((Cout, Cout), lambda i: (0, 0))),
        compiler_params=_mosaic_params(("arbitrary",), vmem_limit),
        cost_estimate=pl.CostEstimate(flops=int(flops), transcendentals=0,
                                      bytes_accessed=int(bytes_acc)),
    )(x, w, scale, shift)


def conv_bn_relu_maxpool(x, w, scale, shift, nsample, tile_g, vmem_limit):
    M_pad, Cin = x.shape
    Cout = w.shape[1]
    G_pad = M_pad // nsample
    kernel = functools.partial(_conv_bn_relu_maxpool_kernel,
                               nsample=nsample, tile_g=tile_g)
    flops = 2 * M_pad * Cin * Cout
    bytes_acc = M_pad * Cin * 2 + (Cin + 2) * Cout * 4 + G_pad * Cout * 4
    return pl.pallas_call(
        kernel,
        out_shape=jax.ShapeDtypeStruct((G_pad, Cout), jnp.float32),
        grid=(G_pad // tile_g,),
        in_specs=[
            pl.BlockSpec((tile_g * nsample, Cin), lambda i: (i, 0)),
            pl.BlockSpec((Cin, Cout), lambda i: (0, 0)),
            pl.BlockSpec((1, Cout), lambda i: (0, 0)),
            pl.BlockSpec((1, Cout), lambda i: (0, 0)),
        ],
        out_specs=pl.BlockSpec((tile_g, Cout), lambda i: (i, 0)),
        compiler_params=_mosaic_params(("parallel",), vmem_limit),
        cost_estimate=pl.CostEstimate(flops=int(flops), transcendentals=0,
                                      bytes_accessed=int(bytes_acc)),
    )(x, w, scale, shift)


def bn_fold(colsum, gram, m_rows, w, gamma, beta, eps=_EPS):
    """Training-mode BatchNorm2d stats of y = x @ w derived analytically from
    colsum(x) and x^T x (biased variance), folded into per-channel scale/shift
    so the kernel does one FMA per element.  The conv bias is exactly cancelled
    by BN mean subtraction and is therefore dropped entirely.
    Note: E[y^2]-E[y]^2 in f32 can lose precision when |mean| >> std; variance
    is clamped at 0 and the Gram is accumulated in f32 to mitigate this."""
    w = w.astype(jnp.float32)
    mean_x = colsum / m_rows                                  # (1, Cin)
    mean_y = mean_x @ w                                       # (1, Cout)
    e_y2 = jnp.sum((gram @ w) * w, axis=0, keepdims=True) / m_rows
    var_y = jnp.maximum(e_y2 - jnp.square(mean_y), 0.0)
    scale = gamma * lax.rsqrt(var_y + eps)
    shift = beta - mean_y * scale
    return scale, shift


# --------------------------------------------------------------------------
# Plain-JAX glue: FPS / ball query / grouping (data-dependent gathers, sorts)
# --------------------------------------------------------------------------

def square_distance(src, dst):
    d = -2.0 * jnp.matmul(src, jnp.swapaxes(dst, 1, 2))
    d = d + jnp.sum(src ** 2, axis=-1)[:, :, None]
    d = d + jnp.sum(dst ** 2, axis=-1)[:, None, :]
    return d


def index_points(points, idx):
    B = points.shape[0]
    batch_idx = jnp.arange(B).reshape((B,) + (1,) * (idx.ndim - 1))
    return points[batch_idx, idx]


def farthest_point_sample(xyz, npoint, init_farthest):
    B, N, _ = xyz.shape
    batch_idx = jnp.arange(B)

    def body(i, carry):
        distance, farthest, centroids = carry
        centroids = centroids.at[:, i].set(farthest)
        centroid = xyz[batch_idx, farthest][:, None, :]       # (B,1,3)
        dist = jnp.sum((xyz - centroid) ** 2, axis=-1)        # (B,N)
        distance = jnp.minimum(distance, dist)
        farthest = jnp.argmax(distance, axis=-1).astype(jnp.int32)
        return distance, farthest, centroids

    carry = (jnp.full((B, N), 1e10, dtype=xyz.dtype),
             init_farthest.astype(jnp.int32),
             jnp.zeros((B, npoint), dtype=jnp.int32))
    _, _, centroids = lax.fori_loop(0, npoint, body, carry)
    return centroids


def query_ball_point(radius, nsample, xyz, new_xyz):
    B, N, _ = xyz.shape
    S = new_xyz.shape[1]
    sqrdists = square_distance(new_xyz, xyz)                  # (B,S,N)
    group_idx = jnp.broadcast_to(jnp.arange(N, dtype=jnp.int32), (B, S, N))
    group_idx = jnp.where(sqrdists > radius ** 2, N, group_idx)
    group_idx = jnp.sort(group_idx, axis=-1)[:, :, :nsample]
    group_first = group_idx[:, :, :1]
    group_idx = jnp.where(group_idx == N,
                          jnp.broadcast_to(group_first, group_idx.shape),
                          group_idx)
    return group_idx


def sample_and_group(npoint, radius, nsample, xyz, points, init_farthest):
    fps_idx = farthest_point_sample(xyz, npoint, init_farthest)
    new_xyz = index_points(xyz, fps_idx)                      # (B,S,3)
    idx = query_ball_point(radius, nsample, xyz, new_xyz)     # (B,S,ns)
    grouped_xyz = index_points(xyz, idx)                      # (B,S,ns,3)
    grouped_xyz_norm = grouped_xyz - new_xyz[:, :, None, :]
    if points is not None:
        grouped_points = index_points(points, idx)
        new_points = jnp.concatenate([grouped_xyz_norm, grouped_points], axis=-1)
    else:
        new_points = grouped_xyz_norm
    return new_xyz, new_points


def sample_and_group_all(xyz, points):
    B, N, C = xyz.shape
    new_xyz = jnp.zeros((B, 1, C), dtype=xyz.dtype)
    grouped_xyz = xyz.reshape(B, 1, N, C)
    if points is not None:
        new_points = jnp.concatenate(
            [grouped_xyz, points.reshape(B, 1, N, -1)], axis=-1)
    else:
        new_points = grouped_xyz
    return new_xyz, new_points


# --------------------------------------------------------------------------
# Module
# --------------------------------------------------------------------------

class GIBLiPointNetSetAbstractionPallas:
    def __init__(self, npoint, radius, nsample, in_channel, mlp, group_all, key):
        self.npoint = npoint
        self.radius = radius
        self.nsample = nsample
        self.group_all = group_all
        self.in_channel = in_channel
        self.mlp = list(mlp)
        self._vmem_limit = _vmem_limit_bytes()

        self.params = []      # (w bf16 (Cin,Cout), gamma (1,Cout), beta (1,Cout))
        self.ref_params = []  # unpadded f32 copies for the pure-JAX reference
        last = in_channel
        for out_channel in self.mlp:
            key, kw, kg, kb = jax.random.split(key, 4)
            # Conv2d(last, out, 1): torch weight [out,in,1,1]; stored transposed
            # as (in, out) for the channels-last matmul.  Weights are quantized
            # to bf16 once (same values used by the kernel and the reference).
            w = (jax.random.normal(kw, (last, out_channel), jnp.float32)
                 * (1.0 / jnp.sqrt(last)))
            w = w.astype(jnp.bfloat16).astype(jnp.float32)
            gamma = 1.0 + 0.1 * jax.random.normal(kg, (out_channel,), jnp.float32)
            beta = 0.1 * jax.random.normal(kb, (out_channel,), jnp.float32)
            # Conv bias is not instantiated: BatchNorm mean subtraction cancels
            # it exactly, so dropping it is mathematically equivalent.
            self.params.append((w.astype(jnp.bfloat16),
                                gamma[None, :], beta[None, :]))
            self.ref_params.append((w, gamma[None, :], beta[None, :]))
            last = out_channel
        # TODO(synk): GIBLiLayer is an external, undefined class in the provided
        # source; the `giblis` residual branch (GIBLiLayer + bias-free Linear,
        # added to new_points before each conv) cannot be reproduced and is
        # skipped.

    def __call__(self, xyz, points, fps_key):
        """
        xyz:    (B, 3, N)
        points: (B, D, N) or None
        returns new_xyz (B, 3, npoint/1), new_points (B, mlp[-1], npoint/1)
        """
        xyz = jnp.transpose(xyz, (0, 2, 1))                   # (B,N,3)
        if points is not None:
            points = jnp.transpose(points, (0, 2, 1))         # (B,N,D)

        if self.group_all:
            new_xyz, new_points = sample_and_group_all(xyz, points)
        else:
            B, N = xyz.shape[0], xyz.shape[1]
            init_far = jax.random.randint(fps_key, (B,), 0, N, dtype=jnp.int32)
            new_xyz, new_points = sample_and_group(
                self.npoint, self.radius, self.nsample, xyz, points, init_far)

        B, P, S, C = new_points.shape
        G = B * P
        M = G * S

        # Tiling: whole groups of S rows per tile so the final max-pool shares
        # the same tile boundaries; sized from the device VMEM budget.
        c_max = max([C] + self.mlp)
        tile_g = _choose_tile_g(G, S, c_max, self._vmem_limit)
        G_pad = _round_up(G, tile_g)
        tile_m = tile_g * S
        M_pad = G_pad * S
        need_mask = M_pad != M

        x_raw = new_points.reshape(M, C).astype(jnp.float32)
        if need_mask:
            # Zero row padding so every Pallas block is exact; the zero rows are
            # masked out of the BN statistics inside the conv kernels.
            x_raw = jnp.pad(x_raw, ((0, M_pad - M), (0, 0)))

        # Fused ingest: f32 read -> bf16 write + first layer's BN statistics.
        x, colsum, gram = ingest_stats(x_raw, tile_m, self._vmem_limit)

        m_rows = jnp.float32(M)
        for k in range(len(self.params) - 1):
            w_bf, gamma, beta = self.params[k]
            scale, shift = bn_fold(colsum, gram, m_rows, w_bf, gamma, beta)
            x, colsum, gram = conv_bn_relu_stats(
                x, w_bf, scale, shift, tile_m, M, need_mask, self._vmem_limit)

        # Last layer: conv + BN + ReLU fused with the max over nsample.
        w_bf, gamma, beta = self.params[-1]
        scale, shift = bn_fold(colsum, gram, m_rows, w_bf, gamma, beta)
        pooled = conv_bn_relu_maxpool(x, w_bf, scale, shift, S, tile_g,
                                      self._vmem_limit)

        c_last = self.mlp[-1]
        pooled = pooled[:G]                                   # drop padded groups
        new_points_out = jnp.transpose(pooled.reshape(B, P, c_last), (0, 2, 1))
        new_xyz_out = jnp.transpose(new_xyz, (0, 2, 1))
        return new_xyz_out, new_points_out


# --------------------------------------------------------------------------
# Pure-JAX f32 reference (same semantics, used only for validation)
# --------------------------------------------------------------------------

def reference_forward(module, xyz, points, fps_key, eps=_EPS):
    xyz = jnp.transpose(xyz, (0, 2, 1))
    if points is not None:
        points = jnp.transpose(points, (0, 2, 1))
    if module.group_all:
        new_xyz, new_points = sample_and_group_all(xyz, points)
    else:
        B, N = xyz.shape[0], xyz.shape[1]
        init_far = jax.random.randint(fps_key, (B,), 0, N, dtype=jnp.int32)
        new_xyz, new_points = sample_and_group(
            module.npoint, module.radius, module.nsample, xyz, points, init_far)
    B, P, S, C = new_points.shape
    x = new_points.reshape(B * P * S, C).astype(jnp.float32)
    for (w, gamma, beta) in module.ref_params:
        y = x @ w
        mean = jnp.mean(y, axis=0, keepdims=True)
        var = jnp.mean(jnp.square(y - mean), axis=0, keepdims=True)
        x = jnp.maximum((y - mean) * lax.rsqrt(var + eps) * gamma + beta, 0.0)
    pooled = jnp.max(x.reshape(B * P, S, -1), axis=1)
    new_points_out = jnp.transpose(pooled.reshape(B, P, -1), (0, 2, 1))
    return jnp.transpose(new_xyz, (0, 2, 1)), new_points_out


# --------------------------------------------------------------------------

if __name__ == "__main__":
    key = jax.random.PRNGKey(0)
    k_xyz, k_pts, k_fps, k_par, k_par2 = jax.random.split(key, 5)

    B, N, D = 2, 16, 4
    npoint, nsample, radius = 8, 8, 0.5
    in_channel = D + 3
    mlp = [16, 32]

    xyz = jax.random.uniform(k_xyz, (B, 3, N), jnp.float32)    # coords in [0,1)
    points = jax.random.normal(k_pts, (B, D, N), jnp.float32)

    # --- Standard grouped path -------------------------------------------
    module = GIBLiPointNetSetAbstractionPallas(
        npoint=npoint, radius=radius, nsample=nsample,
        in_channel=in_channel, mlp=mlp, group_all=False, key=k_par)

    new_xyz, new_points = module(xyz, points, fps_key=k_fps)
    jax.block_until_ready((new_xyz, new_points))
    assert new_xyz.shape == (B, 3, npoint), new_xyz.shape
    assert new_points.shape == (B, mlp[-1], npoint), new_points.shape

    ref_xyz, ref_points = reference_forward(module, xyz, points, fps_key=k_fps)
    assert bool(jnp.allclose(new_xyz, ref_xyz, atol=1e-6))
    assert float(jnp.max(jnp.abs(new_points - ref_points))) < 0.2

    # --- Awkward npoint: exercises row padding + stats masking -------------
    module_odd = GIBLiPointNetSetAbstractionPallas(
        npoint=5, radius=radius, nsample=nsample,
        in_channel=in_channel, mlp=mlp, group_all=False, key=k_par)
    odd_xyz, odd_points = module_odd(xyz, points, fps_key=k_fps)
    jax.block_until_ready((odd_xyz, odd_points))
    assert odd_points.shape == (B, mlp[-1], 5), odd_points.shape
    ref_oxyz, ref_opoints = reference_forward(module_odd, xyz, points,
                                              fps_key=k_fps)
    assert bool(jnp.allclose(odd_xyz, ref_oxyz, atol=1e-6))
    assert float(jnp.max(jnp.abs(odd_points - ref_opoints))) < 0.2

    # --- group_all path: exercises the small-G full-extent tiling ----------
    module_all = GIBLiPointNetSetAbstractionPallas(
        npoint=1, radius=radius, nsample=N, in_channel=in_channel,
        mlp=mlp, group_all=True, key=k_par2)
    ga_xyz, ga_points = module_all(xyz, points, fps_key=k_fps)
    jax.block_until_ready((ga_xyz, ga_points))
    assert ga_points.shape == (B, mlp[-1], 1), ga_points.shape
    ref_ga_xyz, ref_ga_points = reference_forward(module_all, xyz, points,
                                                  fps_key=k_fps)
    assert bool(jnp.allclose(ga_xyz, ref_ga_xyz, atol=1e-6))
    assert float(jnp.max(jnp.abs(ga_points - ref_ga_points))) < 0.2

    print("KERNEL_OK")
</pallas_src>

<mosaic_0001>
module attributes {stable_mosaic.version = 11 : i64} {
  func.func @_ingest_stats_kernel(%arg0: i32, %arg1: memref<128x7xf32, #tpu.memory_space<vmem>>, %arg2: memref<128x7xbf16, #tpu.memory_space<vmem>>, %arg3: memref<1x7xf32, #tpu.memory_space<vmem>>, %arg4: memref<7x7xf32, #tpu.memory_space<vmem>>) attributes {dimension_semantics = [#tpu.dimension_semantics<arbitrary>], iteration_bounds = array<i64: 1>, scalar_prefetch = 0 : i64, scratch_operands = 0 : i64, tpu.core_type = #tpu.core_type<tc>, window_params = [{transform_indices = @transform_0, window_bounds = array<i64: 128, 7>}, {transform_indices = @transform_1, window_bounds = array<i64: 128, 7>}, {pipeline_mode = #tpu.pipeline_mode<synchronous>, transform_indices = @transform_2, window_bounds = array<i64: 1, 7>}, {pipeline_mode = #tpu.pipeline_mode<synchronous>, transform_indices = @transform_3, window_bounds = array<i64: 7, 7>}]} {
    %c0_i32 = arith.constant 0 : i32
    %0 = arith.cmpi eq, %arg0, %c0_i32 : i32
    %1 = arith.extui %0 : i1 to i32
    %c0_i32_0 = arith.constant 0 : i32
    %2 = arith.cmpi ne, %1, %c0_i32_0 : i32
    scf.if %2 {
      %cst_13 = arith.constant 0.000000e+00 : f32
      %15 = vector.broadcast %cst_13 : f32 to vector<1x7xf32>
      %c0_14 = arith.constant 0 : index
      %c0_15 = arith.constant 0 : index
      %16 = vector.load %arg3[%c0_14, %c0_15] : memref<1x7xf32, #tpu.memory_space<vmem>>, vector<1x7xf32>
      tpu.vector_store %arg3[%c0_14, %c0_15], %15 {strides = array<i32>} : memref<1x7xf32, #tpu.memory_space<vmem>>, vector<1x7xf32>,
      %cst_16 = arith.constant 0.000000e+00 : f32
      %17 = vector.broadcast %cst_16 : f32 to vector<7x7xf32>
      %c0_17 = arith.constant 0 : index
      %c0_18 = arith.constant 0 : index
      %18 = vector.load %arg4[%c0_17, %c0_18] : memref<7x7xf32, #tpu.memory_space<vmem>>, vector<7x7xf32>
      tpu.vector_store %arg4[%c0_17, %c0_18], %17 {strides = array<i32>} : memref<7x7xf32, #tpu.memory_space<vmem>>, vector<7x7xf32>,
    } else {
    }
    %c0 = arith.constant 0 : index
    %c0_1 = arith.constant 0 : index
    %3 = vector.load %arg1[%c0, %c0_1] : memref<128x7xf32, #tpu.memory_space<vmem>>, vector<128x7xf32>
    %4 = arith.truncf %3 : vector<128x7xf32> to vector<128x7xbf16>
    %c0_2 = arith.constant 0 : index
    %c0_3 = arith.constant 0 : index
    %5 = vector.load %arg2[%c0_2, %c0_3] : memref<128x7xbf16, #tpu.memory_space<vmem>>, vector<128x7xbf16>
    tpu.vector_store %arg2[%c0_2, %c0_3], %4 {strides = array<i32>} : memref<128x7xbf16, #tpu.memory_space<vmem>>, vector<128x7xbf16>,
    %c0_4 = arith.constant 0 : index
    %c0_5 = arith.constant 0 : index
    %6 = vector.load %arg3[%c0_4, %c0_5] : memref<1x7xf32, #tpu.memory_space<vmem>>, vector<1x7xf32>
    %cst = arith.constant dense<0.000000e+00> : vector<7xf32>
    %7 = vector.multi_reduction <add>, %3, %cst [0] : vector<128x7xf32> to vector<7xf32>
    %8 = vector.shape_cast %7 : vector<7xf32> to vector<1x7xf32>
    %9 = arith.addf %6, %8 : vector<1x7xf32>
    %c0_6 = arith.constant 0 : index
    %c0_7 = arith.constant 0 : index
    %10 = vector.load %arg3[%c0_6, %c0_7] : memref<1x7xf32, #tpu.memory_space<vmem>>, vector<1x7xf32>
    tpu.vector_store %arg3[%c0_6, %c0_7], %9 {strides = array<i32>} : memref<1x7xf32, #tpu.memory_space<vmem>>, vector<1x7xf32>,
    %c0_8 = arith.constant 0 : index
    %c0_9 = arith.constant 0 : index
    %11 = vector.load %arg4[%c0_8, %c0_9] : memref<7x7xf32, #tpu.memory_space<vmem>>, vector<7x7xf32>
    %cst_10 = arith.constant dense<0.000000e+00> : vector<7x7xf32>
    %12 = tpu.matmul %3, %3, %cst_10 {dimension_numbers = #tpu.dot_dimension_numbers<[0], [0], [1], [1], [0, 1, 1, 1], [], []>} : vector<128x7xf32>, vector<128x7xf32>, vector<7x7xf32> -> vector<7x7xf32>
    %13 = arith.addf %11, %12 : vector<7x7xf32>
    %c0_11 = arith.constant 0 : index
    %c0_12 = arith.constant 0 : index
    %14 = vector.load %arg4[%c0_11, %c0_12] : memref<7x7xf32, #tpu.memory_space<vmem>>, vector<7x7xf32>
    tpu.vector_store %arg4[%c0_11, %c0_12], %13 {strides = array<i32>} : memref<7x7xf32, #tpu.memory_space<vmem>>, vector<7x7xf32>,
    return
  }
  func.func @transform_0(%arg0: i32) -> (i32, i32) {
    %c0_i32 = arith.constant 0 : i32
    %c0_i32_0 = arith.constant 0 : i32
    return %arg0, %c0_i32 : i32, i32
  }
  func.func @transform_1(%arg0: i32) -> (i32, i32) {
    %c0_i32 = arith.constant 0 : i32
    %c0_i32_0 = arith.constant 0 : i32
    return %arg0, %c0_i32 : i32, i32
  }
  func.func @transform_2(%arg0: i32) -> (i32, i32) {
    %c0_i32 = arith.constant 0 : i32
    %c0_i32_0 = arith.constant 0 : i32
    %c0_i32_1 = arith.constant 0 : i32
    return %c0_i32, %c0_i32_0 : i32, i32
  }
  func.func @transform_3(%arg0: i32) -> (i32, i32) {
    %c0_i32 = arith.constant 0 : i32
    %c0_i32_0 = arith.constant 0 : i32
    %c0_i32_1 = arith.constant 0 : i32
    return %c0_i32, %c0_i32_0 : i32, i32
  }
}

</mosaic_0001>

<bundles_post_ra>
// kernel: tpu_custom_call.1
= control target key start
LH: loop header
LB: loop body
LE: loop exit
PB: predicated region body
PF: predicated region fallthrough
CT: control target
= control target key end

     0   :  { %9 = vsyncpa [#allocation3], 0  ;;  %vm53_vm0 = vcmask 52224   ;;  %vm71_vm1 = vcmask 56320   ;;  %s477_s0 = inlined_call_operand.vmem [shape: f32[128,7], index: 0, kind: input, shape index: {}]   ;;  %s478_s1 = inlined_call_operand.vmem [shape: bf16[128,7], index: 1, kind: output, shape index: {0}]   ;;  %s479_s2 = inlined_call_operand.hbm [shape: f32[1,7], index: 2, kind: output, shape index: {1}]   ;;  %s480_s3 = inlined_call_operand.hbm [shape: f32[7,7], index: 3, kind: output, shape index: {2}]  }
   0x1   :  { %v288_v0 = vld [vmem:[%s477_s0] sm:$0xff]  ;;  %v293_v1 = vld [vmem:[%s477_s0 + $0x8] sm:$0xff]  ;;  %v303_v4 = vld [vmem:[%s477_s0 + $0x10] sm:$0xff] }
   0x2   :  { %v37_v2 = vpack.c.bf16 %v288_v0, %v288_v0  ;;  %113 = vxpose.xlu0.b32.start [1/16] (narrow) %v288_v0, 8  ;;  %v38_v3 = vpack.c.bf16 %v293_v1, %v293_v1  ;;  %v308_v5 = vld [vmem:[%s477_s0 + $0x18] sm:$0xff]  ;;  %v39_v6 = vpack.c.bf16 %v303_v4, %v303_v4  ;;  %v317_v8 = vld [vmem:[%s477_s0 + $0x20] sm:$0xff] }
   0x3   :  { %v40_v7 = vpack.c.bf16 %v308_v5, %v308_v5 }
   0x4   :  { %10 = vsyncpa [#allocation5], 0  ;;  %54 = vst.msk [vmem:[%s478_s1] sm:$0xf] %vm53_vm0, %v37_v2  ;;  %v41_v9 = vpack.c.bf16 %v317_v8, %v317_v8  ;;  %v328_v10 = vld [vmem:[%s477_s0 + $0x28] sm:$0xff]  ;;  %v72_v11 = vsel %vm71_vm1, %v288_v0, 0.0 }
   0x5   :  { %55 = vst.msk [vmem:[%s478_s1 + $0x4] sm:$0xf] %vm53_vm0, %v38_v3  ;;  %v73_v12 = vsel %vm71_vm1, %v293_v1, 0.0  ;;  %v42_v13 = vpack.c.bf16 %v328_v10, %v328_v10  ;;  %v75_v15 = vsel %vm71_vm1, %v303_v4, 0.0  ;;  %v362_v16 = vld [vmem:[%s477_s0 + $0x30] sm:$0xff]  ;;  %v77_v19 = vsel %vm71_vm1, %v308_v5, 0.0 }
   0x6   :  { %56 = vst.msk [vmem:[%s478_s1 + $0x8] sm:$0xf] %vm53_vm0, %v39_v6  ;;  %v74_v14 = vadd.f32 %v73_v12, %v72_v11  ;;  %v43_v17 = vpack.c.bf16 %v362_v16, %v362_v16  ;;  %v79_v21 = vsel %vm71_vm1, %v317_v8, 0.0  ;;  %v378_v22 = vld [vmem:[%s477_s0 + $0x38] sm:$0xff]  ;;  %v81_v25 = vsel %vm71_vm1, %v328_v10, 0.0  ;;  %v29_v28 = vld [vmem:[%s477_s0 + $0x40] sm:$0xff] }
   0x7   :  { %57 = vst.msk [vmem:[%s478_s1 + $0xc] sm:$0xf] %vm53_vm0, %v40_v7  ;;  %v44_v23 = vpack.c.bf16 %v378_v22, %v378_v22  ;;  %v83_v27 = vsel %vm71_vm1, %v362_v16, 0.0  ;;  %v45_v29 = vpack.c.bf16 %v29_v28, %v29_v28  ;;  %v85_v31 = vsel %vm71_vm1, %v378_v22, 0.0  ;;  %v30_v34 = vld [vmem:[%s477_s0 + $0x48] sm:$0xff]  ;;  %v31_v39 = vld [vmem:[%s477_s0 + $0x50] sm:$0xff] }
   0x8   :  { %58 = vst.msk [vmem:[%s478_s1 + $0x10] sm:$0xf] %vm53_vm0, %v41_v9  ;;  %v76_v18 = vadd.f32 %v75_v15, %v74_v14  ;;  %v87_v33 = vsel %vm71_vm1, %v29_v28, 0.0  ;;  %v46_v35 = vpack.c.bf16 %v30_v34, %v30_v34  ;;  %v89_v37 = vsel %vm71_vm1, %v30_v34, 0.0  ;;  %v32_v43 = vld [vmem:[%s477_s0 + $0x58] sm:$0xff]  ;;  %v33_v47 = vld [vmem:[%s477_s0 + $0x60] sm:$0xff] }
   0x9   :  { %59 = vst.msk [vmem:[%s478_s1 + $0x14] sm:$0xf] %vm53_vm0, %v42_v13  ;;  %v47_v40 = vpack.c.bf16 %v31_v39, %v31_v39  ;;  %v91_v41 = vsel %vm71_vm1, %v31_v39, 0.0  ;;  %v48_v44 = vpack.c.bf16 %v32_v43, %v32_v43  ;;  %v93_v45 = vsel %vm71_vm1, %v32_v43, 0.0  ;;  %v34_v51 = vld [vmem:[%s477_s0 + $0x68] sm:$0xff]  ;;  %v35_v55 = vld [vmem:[%s477_s0 + $0x70] sm:$0xff] }
   0xa   :  { %114 = vxpose.xlu0.b32.cont [2/16] (narrow) %v293_v1, 8  ;;  %60 = vst.msk [vmem:[%s478_s1 + $0x18] sm:$0xf] %vm53_vm0, %v43_v17  ;;  %v78_v20 = vadd.f32 %v77_v19, %v76_v18  ;;  %v49_v48 = vpack.c.bf16 %v33_v47, %v33_v47  ;;  %v95_v49 = vsel %vm71_vm1, %v33_v47, 0.0  ;;  %v50_v52 = vpack.c.bf16 %v34_v51, %v34_v51  ;;  %v36_v59 = vld [vmem:[%s477_s0 + $0x78] sm:$0xff]  ;;  %s263_s0 = smov [#allocation2]  }
   0xb   :  { %61 = vst.msk [vmem:[%s478_s1 + $0x1c] sm:$0xf] %vm53_vm0, %v44_v23  ;;  %v97_v53 = vsel %vm71_vm1, %v34_v51, 0.0  ;;  %v51_v56 = vpack.c.bf16 %v35_v55, %v35_v55  ;;  %v99_v57 = vsel %vm71_vm1, %v35_v55, 0.0  ;;  %v52_v60 = vpack.c.bf16 %v36_v59, %v36_v59  ;;  %145 = vmatpush.msra.mxu0 %v36_v59  ;;  %s177_s24 = sshll.u32 %s479_s2, 4  ;;  %s264_s25 = smov [#allocation4]   ;;  %s178_s24 = int_to_ptr.hbm [resolvable:$true] %s177_s24 }
   0xc   :  { %v80_v24 = vadd.f32 %v79_v21, %v78_v20  ;;  %62 = vst.msk [vmem:[%s478_s1 + $0x20] sm:$0xf] %vm53_vm0, %v45_v29  ;;  %v101_v61 = vsel %vm71_vm1, %v36_v59, 0.0  ;;  %vm19_vm2 = vcmask 55296   ;;  %v262_v63 = vmov 0.0   ;;  %s186_s26 = sshll.u32 %s264_s25, 4  ;;  %s187_s26 = int_to_ptr.vmem [resolvable:$true] %s186_s26 }
   0xd   :  { %63 = vst.msk [vmem:[%s478_s1 + $0x24] sm:$0xf] %vm53_vm0, %v46_v35  ;;  %146 = vmatpush.msra.mxu0 %v35_v55  ;;  %vm17_vm3 = vcmask 49152   ;;  %s188_s29 = sshll.u32 %s480_s3, 4  ;;  %s189_s29 = int_to_ptr.hbm [resolvable:$true] %s188_s29 }
   0xe   :  { %v82_v26 = vadd.f32 %v81_v25, %v80_v24  ;;  %64 = vst.msk [vmem:[%s478_s1 + $0x28] sm:$0xf] %vm53_vm0, %v47_v40 }
   0xf   :  { %65 = vst.msk [vmem:[%s478_s1 + $0x2c] sm:$0xf] %vm53_vm0, %v48_v44  ;;  %147 = vmatpush.msra.mxu0 %v34_v51 }
  0x10   :  { %v84_v30 = vadd.f32 %v83_v27, %v82_v26  ;;  %66 = vst.msk [vmem:[%s478_s1 + $0x30] sm:$0xf] %vm53_vm0, %v49_v48 }
  0x11   :  { %67 = vst.msk [vmem:[%s478_s1 + $0x34] sm:$0xf] %vm53_vm0, %v50_v52  ;;  %148 = vmatpush.msra.mxu0 %v33_v47 }
  0x12   :  { %115 = vxpose.xlu0.b32.cont [3/16] (narrow) %v303_v4, 8  ;;  %v86_v32 = vadd.f32 %v85_v31, %v84_v30  ;;  %68 = vst.msk [vmem:[%s478_s1 + $0x38] sm:$0xf] %vm53_vm0, %v51_v56 }
  0x13   :  { %69 = vst.msk [vmem:[%s478_s1 + $0x3c] sm:$0xf] %vm53_vm0, %v52_v60  ;;  %149 = vmatpush.msra.mxu0 %v32_v43  ;;  %s175_s1 = sshll.u32 %s263_s0, 4  ;;  %s176_s1 = int_to_ptr.vmem [resolvable:$true] %s175_s1 }
  0x14   :  { %v88_v36 = vadd.f32 %v87_v33, %v86_v32  ;;  %20 = vst.msk [vmem:[#allocation4] sm:$0x7f] %vm19_vm2, %v262_v63 }
  0x15   :  { %150 = vmatpush.msra.mxu0 %v31_v39  ;;  %18 = vst.msk [vmem:[#allocation2] sm:$0x1] %vm17_vm3, %v262_v63 }
  0x16   :  { %v90_v38 = vadd.f32 %v89_v37, %v88_v36 }
  0x17   :  { %151 = vmatpush.msra.mxu0 %v30_v34 }
  0x18   :  { %v92_v42 = vadd.f32 %v91_v41, %v90_v38 }
  0x19   :  { %152 = vmatpush.msra.mxu0 %v29_v28 }
  0x1a   :  { %116 = vxpose.xlu0.b32.cont [4/16] (narrow) %v308_v5, 8  ;;  %v94_v46 = vadd.f32 %v93_v45, %v92_v42 }
  0x1b   :  { %153 = vmatpush.msra.mxu0 %v378_v22  ;;  %v112_v9 = vld [vmem:[#allocation4] sm:$0x7f] }
  0x1c   :  { %v96_v50 = vadd.f32 %v95_v49, %v94_v46 }
  0x1d   :  { %154 = vmatpush.msra.mxu0 %v362_v16 }
  0x1e   :  { %v98_v54 = vadd.f32 %v97_v53, %v96_v50 }
  0x1f   :  { %155 = vmatpush.msra.mxu0 %v328_v10 }
  0x20   :  { %v100_v58 = vadd.f32 %v99_v57, %v98_v54 }
  0x21   :  { %156 = vmatpush.msra.mxu0 %v317_v8 }
  0x22   :  { %117 = vxpose.xlu0.b32.cont [5/16] (narrow) %v317_v8, 8  ;;  %v102_v62 = vadd.f32 %v101_v61, %v100_v58 }
  0x23   :  { %157 = vmatpush.msra.mxu0 %v308_v5 }
  0x24   :  { %v103_v3 = vrot.slane %v102_v62, 4 }
  0x25   :  { %158 = vmatpush.msra.mxu0 %v303_v4 }
  0x26   :  { %v104_v6 = vadd.f32 %v103_v3, %v102_v62 }
  0x27   :  { %159 = vmatpush.msra.mxu0 %v293_v1  ;;  %v70_v1 = vld [vmem:[#allocation2] sm:$0x1] }
  0x28   :  { %v105_v7 = vrot.slane %v104_v6, 2 }
  0x29   :  { %160 = vmatpush.msra.mxu0 %v288_v0 }
  0x2a   :  { %118 = vxpose.xlu0.b32.cont [6/16] (narrow) %v328_v10, 8  ;;  %v106_v5 = vadd.f32 %v105_v7, %v104_v6 }
  0x2c   :  { %v107_v8 = vrot.slane %v106_v5, 1 }
  0x2e   :  { %v108_v0 = vadd.f32 %v107_v8, %v106_v5 }
  0x30   :  { %v109_v4 = vadd.f32 %v108_v0, %v70_v1 }
  0x32   :  { %119 = vxpose.xlu0.b32.cont [7/16] (narrow) %v362_v16, 8  ;;  %111 = vst.msk [vmem:[#allocation2] sm:$0x1] %vm17_vm3, %v109_v4 }
  0x33   :  { %180 = dma.vmem_to_hbm [thread:$0]  %s176_s1, 16, %s178_s24, [#allocation3]  }
  0x3a   :  { %120 = vxpose.xlu0.b32.cont [8/16] (narrow) %v378_v22, 8 }
  0x42   :  { %121 = vxpose.xlu0.b32.cont [9/16] (narrow) %v29_v28, 8 }
  0x4a   :  { %122 = vxpose.xlu0.b32.cont [10/16] (narrow) %v30_v34, 8 }
  0x52   :  { %123 = vxpose.xlu0.b32.cont [11/16] (narrow) %v31_v39, 8 }
  0x5a   :  { %124 = vxpose.xlu0.b32.cont [12/16] (narrow) %v32_v43, 8 }
  0x62   :  { %125 = vxpose.xlu0.b32.cont [13/16] (narrow) %v33_v47, 8 }
  0x6a   :  { %126 = vxpose.xlu0.b32.cont [14/16] (narrow) %v34_v51, 8 }
  0x72   :  { %127 = vxpose.xlu0.b32.cont [15/16] (narrow) %v35_v55, 8 }
  0x7a   :  { %128 = vxpose.xlu0.b32.end [16/16] (narrow) %v36_v59, 8 }
  0xa6   :  { %v129_v2 = vpop.trf.xlu0 }
  0xa7   :  { %161 = vmatmul.f32.vlgmr.msra.gmra.mxu0 %v129_v2 }
 0x124   :  { %v162_v10 = vpop.f32.mrf.mxu0 }
 0x125   :  { %v165_v11 = vadd.f32 %v162_v10, %v112_v9 }
 0x127   :  { %167 = vst.msk [vmem:[#allocation4] sm:$0x7f] %vm19_vm2, %v165_v11 }
 0x128   :  { %191 = dma.vmem_to_hbm [thread:$0]  %s187_s26, 128, %s189_s29, [#allocation5]  }
 0x129   :  { %258 = dma.done.wait [#allocation3], 16  }
 0x12a   :  { %259 = vsyncadd [#allocation3], 4294967280 }
 0x12b   :  { %260 = dma.done.wait [#allocation5], 128  }
 0x12c   :  { %261 = vsyncadd [#allocation5], 4294967168 }
 0x12d   :  { %202 = vsyncpa [#allocation3], 1 }
 0x12e   :  { %203 = vsyncpa [#allocation5], 1 }

</bundles_post_ra>
